<compile_context>
chip_gen: v6e
topology: v6e:2x2x1
jax: 0.10.0
libtpu: 0.0.40
codegen_flags: <defaults>
</compile_context>

<pallas_src>
import jax
import jax.numpy as jnp
from jax.experimental import pallas as pl
from jax.experimental.pallas import tpu as pltpu


def _round_up(x, m):
    return (x + m - 1) // m * m


def pid_kernel(h_ref, m_ref, w_ref, b_ref, o_ref):
    # h_ref: (TM, H)   f32 hidden-state rows (B*S collapsed)
    # m_ref: (TM, 1)   f32 predicate-position mask (0/1 per row)
    # w_ref: (H, Lp)   bf16 classifier weight (lane-padded, resident)
    # b_ref: (1, Lp)   f32 classifier bias (lane-padded, resident)
    # o_ref: (TM, Lp)  logits
    h = h_ref[...].astype(jnp.bfloat16)  # in-kernel cast: no extra HBM pass
    logits = jnp.dot(h, w_ref[...], preferred_element_type=jnp.float32)
    # Masking the logits is identical to masking the inputs for a finite 0/1
    # row mask (PyTorch masks the inputs; bias is added to masked rows in
    # both formulations).
    o_ref[...] = (logits * m_ref[...] + b_ref[...]).astype(o_ref.dtype)


def prepare_classifier_params(weight, bias):
    """One-time (model-init) lane-padding + bf16 cast of classifier params.

    weight: (H, L) f32 classifier weight (transposed vs torch nn.Linear)
    bias:   (L,)   f32 classifier bias
    Returns (w_padded (H, Lp) bf16, b_padded (1, Lp) f32).
    """
    _, L = weight.shape
    Lp = _round_up(L, 128)  # lane-dense; do NOT pad to 256 (bandwidth-bound)
    w_p = jnp.pad(weight.astype(jnp.bfloat16), ((0, 0), (0, Lp - L)))
    b_p = jnp.pad(bias.astype(jnp.float32), (0, Lp - L)).reshape(1, Lp)
    return w_p, b_p


def model_pid_forward(hidden, mask, w_padded, b_padded, n_labels, *,
                      tm_max=1024, out_dtype=jnp.float32):
    """ModelPID hot path.

    hidden:   (B, S, H) f32 transformer last hidden state
    mask:     (B, S, 1) 0/1 predicate-position mask
    w_padded: (H, Lp)   bf16 classifier weight from prepare_classifier_params
    b_padded: (1, Lp)   f32 classifier bias from prepare_classifier_params
    Returns (B, S, n_labels) logits in out_dtype.
    """
    B, S, H = hidden.shape
    M = B * S
    Lp = w_padded.shape[1]

    # Collapsing leading dims is a free (contiguous) reshape; no cast, no pad.
    h2 = hidden.reshape(M, H)
    m2 = mask.reshape(M, 1).astype(jnp.float32)

    # M tile: sublane-aligned, capped by tm_max, and >= 2 grid steps so the
    # "parallel" axis shards across both v7x TensorCores.
    TM = max(8, min(tm_max, _round_up(pl.cdiv(M, 2), 8)))
    grid = (pl.cdiv(M, TM),)  # ragged last block masked by Pallas; no M pad

    in_bytes = jnp.dtype(hidden.dtype).itemsize
    out_bytes = jnp.dtype(out_dtype).itemsize
    # Double-buffered footprint of all blocks; give 2x headroom, clamp so we
    # stay above v5e's 16 MiB scoped default and below v7x's 64 MiB physical.
    vmem_need = (2 * TM * H * in_bytes + 2 * TM * 4
                 + 2 * H * Lp * 2 + 2 * Lp * 4
                 + 2 * TM * Lp * out_bytes)
    vmem_limit = int(min(max(2 * vmem_need, 16 * 2**20), 32 * 2**20))

    cost = pl.CostEstimate(
        flops=2 * M * H * Lp,
        transcendentals=0,
        bytes_accessed=(M * H * in_bytes + H * Lp * 2 + 4 * M + 4 * Lp
                        + M * Lp * out_bytes),
    )

    out = pl.pallas_call(
        pid_kernel,
        out_shape=jax.ShapeDtypeStruct((M, Lp), out_dtype),
        grid=grid,
        in_specs=[
            pl.BlockSpec((TM, H), lambda i: (i, 0)),
            pl.BlockSpec((TM, 1), lambda i: (i, 0)),
            pl.BlockSpec((H, Lp), lambda i: (0, 0)),   # resident weight block
            pl.BlockSpec((1, Lp), lambda i: (0, 0)),   # resident bias block
        ],
        out_specs=pl.BlockSpec((TM, Lp), lambda i: (i, 0)),
        compiler_params=pltpu.CompilerParams(
            dimension_semantics=("parallel",),
            vmem_limit_bytes=vmem_limit),
        cost_estimate=cost,
    )(h2, m2, w_padded, b_padded)

    return out[:, :n_labels].reshape(B, S, n_labels)


if __name__ == "__main__":
    B, S, H, L = 2, 8, 32, 16  # batch, seq, transformer hidden, n_predicates_labels

    key = jax.random.PRNGKey(0)
    k_h, k_w, k_b, k_m = jax.random.split(key, 4)

    # Simulated transformer last hidden state (stand-in for AutoModel output).
    hidden = jax.random.normal(k_h, (B, S, H), dtype=jnp.float32)

    # Classifier parameters (nn.Linear(H, L) weight stored as (H, L)).
    weight = jax.random.normal(k_w, (H, L), dtype=jnp.float32) * 0.02
    bias = jax.random.normal(k_b, (L,), dtype=jnp.float32) * 0.01

    # Predicate-position mask (has_predicates_positions=True path); 0/1 per token.
    mask = (jax.random.uniform(k_m, (B, S, 1)) > 0.5).astype(jnp.float32)

    # TODO(synk): tokenizer + pretrained transformer encoder, word_ids-based
    # mask construction, and training-mode dropout are external / host-side /
    # stochastic and not implemented; eval-mode dropout is the identity.

    # Done once at model init (parameters), not per forward call.
    w_padded, b_padded = prepare_classifier_params(weight, bias)

    out = model_pid_forward(hidden, mask, w_padded, b_padded, L)
    out = jax.block_until_ready(out)

    # Reference check (bf16-cast operands, f32 accumulate, as the kernel does).
    h_ref = hidden.astype(jnp.bfloat16).astype(jnp.float32)
    w_ref = weight.astype(jnp.bfloat16).astype(jnp.float32)
    ref = (h_ref * mask) @ w_ref + bias

    assert out.shape == (B, S, L)
    assert jnp.allclose(out, ref, atol=1e-3, rtol=1e-3)

    print("KERNEL_OK")
</pallas_src>

<mosaic_0001>
module attributes {stable_mosaic.version = 11 : i64} {
  func.func @pid_kernel(%arg0: i32, %arg1: memref<8x32xf32, #tpu.memory_space<vmem>>, %arg2: memref<8x1xf32, #tpu.memory_space<vmem>>, %arg3: memref<32x128xbf16, #tpu.memory_space<vmem>>, %arg4: memref<1x128xf32, #tpu.memory_space<vmem>>, %arg5: memref<8x128xf32, #tpu.memory_space<vmem>>) attributes {dimension_semantics = [#tpu.dimension_semantics<parallel>], iteration_bounds = array<i64: 2>, scalar_prefetch = 0 : i64, scratch_operands = 0 : i64, tpu.core_type = #tpu.core_type<tc>, window_params = [{transform_indices = @transform_0, window_bounds = array<i64: 8, 32>}, {transform_indices = @transform_1, window_bounds = array<i64: 8, 1>}, {pipeline_mode = #tpu.pipeline_mode<synchronous>, transform_indices = @transform_2, window_bounds = array<i64: 32, 128>}, {pipeline_mode = #tpu.pipeline_mode<synchronous>, transform_indices = @transform_3, window_bounds = array<i64: 1, 128>}, {transform_indices = @transform_4, window_bounds = array<i64: 8, 128>}]} {
    %c0 = arith.constant 0 : index
    %c0_0 = arith.constant 0 : index
    %0 = vector.load %arg1[%c0, %c0_0] : memref<8x32xf32, #tpu.memory_space<vmem>>, vector<8x32xf32>
    %1 = arith.truncf %0 : vector<8x32xf32> to vector<8x32xbf16>
    %c0_1 = arith.constant 0 : index
    %c0_2 = arith.constant 0 : index
    %2 = vector.load %arg3[%c0_1, %c0_2] : memref<32x128xbf16, #tpu.memory_space<vmem>>, vector<32x128xbf16>
    %cst = arith.constant dense<0.000000e+00> : vector<8x128xf32>
    %3 = tpu.matmul %1, %2, %cst {dimension_numbers = #tpu.dot_dimension_numbers<[1], [0], [0], [1], [0, 0, 1, 1], [], []>} : vector<8x32xbf16>, vector<32x128xbf16>, vector<8x128xf32> -> vector<8x128xf32>
    %c0_3 = arith.constant 0 : index
    %c0_4 = arith.constant 0 : index
    %4 = vector.load %arg2[%c0_3, %c0_4] : memref<8x1xf32, #tpu.memory_space<vmem>>, vector<8x1xf32>
    %5 = vector.broadcast %4 : vector<8x1xf32> to vector<8x128xf32>
    %6 = arith.mulf %3, %5 : vector<8x128xf32>
    %c0_5 = arith.constant 0 : index
    %c0_6 = arith.constant 0 : index
    %7 = vector.load %arg4[%c0_5, %c0_6] : memref<1x128xf32, #tpu.memory_space<vmem>>, vector<1x128xf32>
    %8 = vector.broadcast %7 : vector<1x128xf32> to vector<8x128xf32>
    %9 = arith.addf %6, %8 : vector<8x128xf32>
    %c0_7 = arith.constant 0 : index
    %c0_8 = arith.constant 0 : index
    %10 = vector.load %arg5[%c0_7, %c0_8] : memref<8x128xf32, #tpu.memory_space<vmem>>, vector<8x128xf32>
    tpu.vector_store %arg5[%c0_7, %c0_8], %9 {strides = array<i32>} : memref<8x128xf32, #tpu.memory_space<vmem>>, vector<8x128xf32>,
    return
  }
  func.func @transform_0(%arg0: i32) -> (i32, i32) {
    %c0_i32 = arith.constant 0 : i32
    %c0_i32_0 = arith.constant 0 : i32
    return %arg0, %c0_i32 : i32, i32
  }
  func.func @transform_1(%arg0: i32) -> (i32, i32) {
    %c0_i32 = arith.constant 0 : i32
    %c0_i32_0 = arith.constant 0 : i32
    return %arg0, %c0_i32 : i32, i32
  }
  func.func @transform_2(%arg0: i32) -> (i32, i32) {
    %c0_i32 = arith.constant 0 : i32
    %c0_i32_0 = arith.constant 0 : i32
    %c0_i32_1 = arith.constant 0 : i32
    return %c0_i32, %c0_i32_0 : i32, i32
  }
  func.func @transform_3(%arg0: i32) -> (i32, i32) {
    %c0_i32 = arith.constant 0 : i32
    %c0_i32_0 = arith.constant 0 : i32
    %c0_i32_1 = arith.constant 0 : i32
    return %c0_i32, %c0_i32_0 : i32, i32
  }
  func.func @transform_4(%arg0: i32) -> (i32, i32) {
    %c0_i32 = arith.constant 0 : i32
    %c0_i32_0 = arith.constant 0 : i32
    return %arg0, %c0_i32 : i32, i32
  }
}

</mosaic_0001>

<bundles_post_ra>
// kernel: tpu_custom_call.1
= control target key start
LH: loop header
LB: loop body
LE: loop exit
PB: predicated region body
PF: predicated region fallthrough
CT: control target
= control target key end

     0   :  { %9 = vsyncpa [#allocation3], 0  ;;  %s734_s0 = inlined_call_operand.vmem [shape: f32[16,32], index: 0, kind: input, shape index: {}]   ;;  %s735_s1 = inlined_call_operand.vmem [shape: f32[16,1], index: 1, kind: input, shape index: {}]   ;;  %s736_s2 = inlined_call_operand.hbm [shape: bf16[32,128], index: 2, kind: input, shape index: {}]   ;;  %s737_s3 = inlined_call_operand.vmem [shape: f32[1,128], index: 3, kind: input, shape index: {}]   ;;  %s738_s4 = inlined_call_operand.hbm [shape: f32[16,128], index: 4, kind: output, shape index: {}]  }
   0x1   :  { %10 = vsyncpa [#allocation4], 0 }
   0x2   :  { %12 = vsyncpa [#allocation4 + $0x1], 0  ;;  %s611_s15 = smov 0   ;;  %s613_s16 = smov 0  }
   0x3   :  { %s615_s17 = smov 0   ;;  %s617_s18 = smov 0  }
   0x4 LB: > { %s632_s19 = sadd.s32 4294967295, %s577_s18   ;;  %s401_s20 = sadd.s32 4294967294, %s577_s18   ;;  %s577_s18 = sphi %s617_s18, %s746_s18   ;;  %s573_s17 = sphi %s615_s17, %s745_s17   ;;  %s569_s16 = sphi %s613_s16, %s744_s16   ;;  %s565_s15 = sphi %s611_s15, %s743_s15  }
   0x5   : > { %s636_s21 = sadd.s32 1, %s577_s18   ;;  %s119_s22 = sadd.s32 1, %s573_s17 }
   0x6   : > { %s116_s23 = ssub.s32 %s577_s18, %s636_s21  ;;  %p129_p0 = scmp.ne.s32.totalorder %s573_s17, %s569_s16 }
   0x7   : > { %p117_p1 = scmp.eq.s32.totalorder %s116_s23, 0  ;;  %p130_p2 = scmp.eq.s32.totalorder %s632_s19, 1 }
   0x8   : > { %p135_p3 = scmp.ne.s32.totalorder %s569_s16, %s565_s15  ;;  %p136_p4 = scmp.eq.s32.totalorder %s401_s20, 1 }
   0x9   : > { %s647_s24 = scalar_select %p117_p1, %s573_s17, %s119_s22  }
   0xa   : > { %p649_p5 = por %p130_p2, %p129_p0  ;;  %p653_p6 = por %p136_p4, %p135_p3 }
   0xb   : > { %p402_p7 = scmp.ge.s32.totalorder %s577_s18, 1  ;;  %p143_p8 = scmp.lt.s32.totalorder %s577_s18, 3 }
   0xc   : > { %s740_s26 = scalar_select %p653_p6, 1, 0 }
   0xd   : > { %p443_p9 = scmp.eq.s32.totalorder %s632_s19, 0  ;;  %p660_p10 = pnand %p402_p7, %p143_p8 }
   0xe   : > { %s579_s28 = smov [#allocation2]  }
   0xf   : > { %s155_s29 = sshll.u32 %s579_s28, 4  ;;  %p435_p11 = pneg %p660_p10  ;;  %s156_s29 = int_to_ptr.vmem [resolvable:$true] %s155_s29 }
  0x10   : > { %s498_s30 = scalar_lea.vmem %s156_s29, 256  ;;  %p506_p3 = scmp.lt.s32.totalorder %s156_s29, %s156_s29 }
  0x11   : > { %p436_p12 = pnand %p443_p9, %p435_p11  ;;  %p499_p0 = scmp.ne.s32.totalorder %s156_s29, %s498_s30 }
  0x12   : > { %p507_p4 = scmp.lt.s32.totalorder %s498_s30, %s498_s30 }
  0x13   : > { %p489_p13 = pneg %p436_p12 }
  0x14   : > { %p508_p6 = por %p507_p4, %p506_p3 }
  0x15   : > { %p501_p1 = pnand %p499_p0, %p489_p13 }
  0x17   : > { %p502_p2 = pneg %p501_p1 }
  0x19   : > { %p509_p7 = pnand %p508_p6, %p502_p2 }
  0x1b   : > { %512 = shalt.err (!%p509_p7)
}
  0x1c   : > { %s580_s5 = smov 64   ;;  %s581_s6 = smov 4  }
  0x1d   : > { %438 = dma.hbm_to_vmem [thread:$0]  (!%p436_p12), %s736_s2, 256, %s156_s29, [#allocation3], %s580_s5, %s580_s5, %s581_s6  }
  0x1e   : > { %188 = sbr.rel (%p660_p10) target bundleno = 256 (0x100), region = 36 }
  0x23   : > { %556 = dma.done.wait (%p443_p9), [#allocation3], 256  }
  0x24   : > { %558 = vsyncadd (%p443_p9), [#allocation3], 4294967040  ;;  %p217_p8 = scmp.lt.s32.totalorder %s632_s19, 1  ;;  %v582_v0 = vmov 0.0   ;;  %vm583_vm0 = vmmov 0   ;;  %v584_v1 = vmov 0  }
  0x25   : > { %421 = vmatprep.subr.bf16.mxu0 %v582_v0  ;;  %425 = vmatprep.mubr.msk.bf16.mxu0 %vm583_vm0, %v582_v0  ;;  %v485_v2 = vld [vmem:[#allocation2 + $0x8] sm:$0xff]   ;;  %v486_v3 = vld [vmem:[#allocation2] sm:$0xff]   ;;  %vm244_vm1 = vcmask 261120   ;;  %s214_s23 = sand.u32 1, %s569_s16   ;;  %s415_s30 = sshll.u32 %s632_s19, 7 }
  0x26   : > { %s218_s9 = scalar_select %p217_p8, %s632_s19, 1  ;;  %484 = vset.pattern.permute.xlu0 %v584_v1  ;;  %422 = vmatpush3.bf16.msra.mxu0 %v485_v2  ;;  %v413_v9 = vld [vmem:[%s737_s3] ss:$0 sm:$0xff] }
  0x27   : > { %423 = vmatprep.subr.bf16.mxu0 %v582_v0  ;;  %s407_s27 = sshll.u32 %s214_s23, 3  ;;  %s585_s11 = smov [#allocation5]  }
  0x28   : > { %s408_s10 = sshll.u32 %s218_s9, 3  ;;  %s216_s5 = scalar_lea.vmem [#allocation5], %s407_s27 }
  0x29   : > { %s220_s13 = scalar_lea.vmem %s734_s0, %s408_s10  ;;  %s224_s22 = scalar_lea.vmem %s735_s1, %s408_s10 }
  0x2a   : > { %v226_v4 = vld [vmem:[%s220_s13] sm:$0xff]  ;;  %424 = vmatpush3.bf16.msra.mxu0 %v486_v3  ;;  %s318_s6 = sshll.u32 %s216_s5, 4  ;;  %s693_s9 = scalar_lea.hbm %s738_s4, %s415_s30  ;;  %s695_s6 = int_to_ptr.vmem [resolvable:$true] %s318_s6 }
  0x2b   : > { %v288_v5 = vld [vmem:[%s224_s22] sm:$0xff]  ;;  %v227_v6 = vpack.c.bf16 %v226_v4, %v226_v4  ;;  %s305_s10 = scalar_lea.sflag [#allocation4], %s214_s23  ;;  %s513_s19 = scalar_lea.vmem %s695_s6, 128 }
  0x2c   : > { %291 = vperm.xlu0 %484, %v288_v5   ;;  %p514_p6 = scmp.ne.s32.totalorder %s695_s6, %s513_s19  ;;  %s517_s12 = sshll.u32 %s585_s11, 4  ;;  %s518_s12 = int_to_ptr.vmem [resolvable:$false] %s517_s12 }
  0x2d   : > { %426 = vmatmul.mubr.msk.bf16.vlgmr.msra.gmra.mxu0 %vm244_vm1, %v227_v6  ;;  %s519_s13 = scalar_lea.vmem %s518_s12, 256  ;;  %p520_p11 = scmp.lt.s32.totalorder %s695_s6, %s518_s12 }
  0x2e   : > { %p515_p9 = pnand %p514_p6, %p649_p5  ;;  %p521_p12 = scmp.lt.s32.totalorder %s519_s13, %s513_s19 }
  0x30   : > { %p516_p10 = pneg %p515_p9  ;;  %p522_p13 = por %p521_p12, %p520_p11 }
  0x32   : > { %p523_p0 = pnand %p522_p13, %p516_p10 }
  0xa7   : > { %v292_v7 = vpop.permute.xlu0 %291 }
  0xed   : > { %v282_v8 = vpop.f32.mrf.mxu0 }
  0xee   : > { %v294_v10 = vmul.f32 %v292_v7, %v282_v8 }
  0xef   : > { %v427_v11 = vpop.f32.mrf.mxu0 }
  0xf0   : > { %v302_v12 = vadd.f32 %v413_v9, %v294_v10 }
  0xf1   : > { %v285_v13 = vpop.f32.mrf.mxu0 }
  0xf2   : > { %303 = vst [vmem:[%s216_s5] sm:$0xff] %v302_v12 }
  0xf3   : > { %v428_v14 = vpop.f32.mrf.mxu0 }
  0xf4   : > { %526 = shalt.err (!%p523_p0)
}
  0xf5   : > { %s527_s14 = scalar_lea.hbm %s693_s9, 128  ;;  %s531_s23 = scalar_lea.hbm %s738_s4, 256 }
  0xf6   : > { %p528_p1 = scmp.ne.s32.totalorder %s693_s9, %s527_s14  ;;  %p532_p4 = scmp.lt.s32.totalorder %s693_s9, %s738_s4 }
  0xf7   : > { %p533_p7 = scmp.lt.s32.totalorder %s531_s23, %s527_s14 }
  0xf8   : > { %p529_p2 = pnand %p528_p1, %p649_p5 }
  0xf9   : > { %p534_p8 = por %p533_p7, %p532_p4 }
  0xfa   : > { %p530_p3 = pneg %p529_p2 }
  0xfc   : > { %p535_p6 = pnand %p534_p8, %p530_p3 }
  0xfe   : > { %538 = shalt.err (!%p535_p6)
}
  0xff   : > { %433 = dma.vmem_to_hbm [thread:$0]  (%p649_p5), %s695_s6, 128, %s693_s9, %s305_s10  }
 0x100 PF: > { %p445_p9 = scmp.ge.s32.totalorder %s577_s18, 2  ;;  %s330_s29 = sand.u32 1, %s565_s15  }
 0x101   : > { %p742_p10 = scmp.ne.s32.totalorder %s740_s26, 0  ;;  %s331_s30 = scalar_lea.sflag [#allocation4], %s330_s29 }
 0x103   : > { %p440_p11 = pnand %p445_p9, %p742_p10 }
 0x105   : > { %p441_p12 = pneg %p440_p11 }
 0x107   : > { %560 = dma.done.wait (%p441_p12), %s331_s30, 128  }
 0x108   : > { %562 = vsyncadd (%p441_p12), %s331_s30, 4294967168  ;;  %p15_p13 = scmp.ge.s32.totalorder %s636_s21, 4   ;;  %s743_s15 = smov %s569_s16 }
 0x109   : > { %s744_s16 = smov %s573_s17  ;;  %s745_s17 = smov %s647_s24 }
 0x10a   : > { %s746_s18 = smov %s636_s21  ;;  %17 = sbr.rel (!%p15_p13) target bundleno = 4 (0x4), region = 79 }
 0x10f   :  { %336 = vsyncpa [#allocation3], 1 }
 0x110   :  { %338 = vsyncpa [#allocation3 + $0x1], 1 }
 0x111   :  { %339 = vsyncpa [#allocation4], 1 }
 0x112   :  { %341 = vsyncpa [#allocation4 + $0x1], 1 }

</bundles_post_ra>
